<compile_context>
chip_gen: v7x
topology: tpu7x:2x2x1
jax: 0.10.0
libtpu: 0.0.40
codegen_flags: <defaults>
</compile_context>

<pallas_src>
import math

import numpy as np
import jax
import jax.numpy as jnp
from jax.experimental import pallas as pl
from jax.experimental.pallas import tpu as pltpu

# ---- module hyper-parameters: CLinear(in_dim, out_dim, cond_dim, ...) ------
BATCH = 16
IN_DIM = 8
COND_DIM = 6
OUT_DIM = 32          # n_nodes in the surrounding NSF_AR model
BATCH_NORM = True
BN_EPS = 1e-5


# ----------------------------- Pallas kernel --------------------------------
def _clinear_kernel(xc_ref, w_ref, p_ref, o_ref):
    # xc_ref: (B, IN_DIM + COND_DIM)      pre-concatenated activations
    # w_ref : (2, IN_DIM + COND_DIM, OUT_DIM)   [W_a ; W_g] stacked on axis 0
    # p_ref : (4, OUT_DIM)                rows = [b_a, b_g, gamma, beta]
    xc = xc_ref[...]

    # Two lane-0-aligned MXU dots (no wide dot + mid-vreg lane slice).
    a = jnp.dot(xc, w_ref[0], preferred_element_type=jnp.float32) + p_ref[0:1, :]
    g = jnp.dot(xc, w_ref[1], preferred_element_type=jnp.float32) + p_ref[1:2, :]

    # GLU gate followed by the activation (tanh).
    out = jnp.tanh(a * jax.nn.sigmoid(g))

    if BATCH_NORM:
        # Training-mode batch statistics, biased variance, via E[x^2]-mean^2.
        mean = jnp.mean(out, axis=0, keepdims=True)                 # (1, OUT)
        mean_sq = jnp.mean(out * out, axis=0, keepdims=True)        # (1, OUT)
        var = mean_sq - mean * mean
        out = (out - mean) * jax.lax.rsqrt(var + BN_EPS)
        out = out * p_ref[2:3, :] + p_ref[3:4, :]

    o_ref[...] = out


def _clinear_forward_impl(x, cond, w_stack, p_block):
    # Concatenate outside the kernel (cheap XLA op, keeps the XLU lane-shift
    # off the kernel's critical path) and issue one fused pallas_call.
    xc = jnp.concatenate([x, cond], axis=1)                         # (B, IN+COND)

    k = IN_DIM + COND_DIM
    bytes_accessed = 4 * (BATCH * k + 2 * k * OUT_DIM + 4 * OUT_DIM
                          + BATCH * OUT_DIM)
    vmem = lambda: pl.BlockSpec(memory_space=pltpu.MemorySpace.VMEM)

    return pl.pallas_call(
        _clinear_kernel,
        out_shape=jax.ShapeDtypeStruct((BATCH, OUT_DIM), jnp.float32),
        in_specs=[vmem(), vmem(), vmem()],
        out_specs=vmem(),
        cost_estimate=pl.CostEstimate(
            flops=2 * BATCH * k * (2 * OUT_DIM),
            transcendentals=2 * BATCH * OUT_DIM,
            bytes_accessed=bytes_accessed,
        ),
    )(xc, w_stack, p_block)


clinear_forward = jax.jit(_clinear_forward_impl)


# ------------------- pure-JAX reference (PyTorch layout) --------------------
def clinear_reference(x, cond, p):
    h = (x @ p['w_lin'].T + p['b_lin']) + (cond @ p['w_cond'].T + p['b_cond'])
    a, g = h[:, :OUT_DIM], h[:, OUT_DIM:]
    out = jnp.tanh(a * jax.nn.sigmoid(g))
    if BATCH_NORM:
        mean = jnp.mean(out, axis=0, keepdims=True)
        var = jnp.mean(jnp.square(out - mean), axis=0, keepdims=True)
        out = (out - mean) / jnp.sqrt(var + BN_EPS) * p['gamma'] + p['beta']
    return out


# ----------------- deterministic synthetic parameter init -------------------
def init_params(key):
    ks = jax.random.split(key, 6)

    def u(k, shape, bound):
        return jax.random.uniform(k, shape, minval=-bound, maxval=bound,
                                  dtype=jnp.float32)

    # nn.Linear default init: U(-1/sqrt(fan_in), 1/sqrt(fan_in)),
    # weights kept in PyTorch (out, in) layout for the reference.
    w_lin = u(ks[0], (2 * OUT_DIM, IN_DIM), 1.0 / math.sqrt(IN_DIM))
    b_lin = u(ks[1], (2 * OUT_DIM,), 1.0 / math.sqrt(IN_DIM))
    w_cond = u(ks[2], (2 * OUT_DIM, COND_DIM), 1.0 / math.sqrt(COND_DIM))
    b_cond = u(ks[3], (2 * OUT_DIM,), 1.0 / math.sqrt(COND_DIM))
    # non-trivial BN affine so the batch-norm path is actually exercised
    gamma = 1.0 + 0.1 * u(ks[4], (OUT_DIM,), 1.0)
    beta = 0.1 * u(ks[5], (OUT_DIM,), 1.0)

    p_torch = dict(w_lin=w_lin, b_lin=b_lin, w_cond=w_cond, b_cond=b_cond,
                   gamma=gamma, beta=beta)

    # One-time host-side packing for the fused kernel:
    #   W_a = [W_lin[:OUT].T ; W_cond[:OUT].T]   (IN+COND, OUT)  -> "a" half
    #   W_g = [W_lin[OUT:].T ; W_cond[OUT:].T]   (IN+COND, OUT)  -> gate half
    # stacked on a leading axis so the kernel never slices mid-vreg lanes.
    w_a = jnp.concatenate([w_lin[:OUT_DIM].T, w_cond[:OUT_DIM].T], axis=0)
    w_g = jnp.concatenate([w_lin[OUT_DIM:].T, w_cond[OUT_DIM:].T], axis=0)
    w_stack = jnp.stack([w_a, w_g], axis=0)                 # (2, IN+COND, OUT)

    b_a = b_lin[:OUT_DIM] + b_cond[:OUT_DIM]
    b_g = b_lin[OUT_DIM:] + b_cond[OUT_DIM:]
    p_block = jnp.stack([b_a, b_g, gamma, beta], axis=0)    # (4, OUT)

    p_kernel = dict(w_stack=w_stack, p_block=p_block)
    return p_torch, p_kernel


if __name__ == "__main__":
    key = jax.random.PRNGKey(0)
    kx, kc, kp = jax.random.split(key, 3)
    x = jax.random.uniform(kx, (BATCH, IN_DIM), minval=-2.0, maxval=2.0,
                           dtype=jnp.float32)
    cond = jax.random.uniform(kc, (BATCH, COND_DIM), minval=-1.0, maxval=1.0,
                              dtype=jnp.float32)
    p_torch, p_kernel = init_params(kp)

    out = clinear_forward(x, cond, p_kernel['w_stack'], p_kernel['p_block'])
    out = jax.block_until_ready(out)

    ref = clinear_reference(x, cond, p_torch)
    out_np, ref_np = np.asarray(out), np.asarray(ref)
    assert out_np.shape == (BATCH, OUT_DIM)
    assert np.all(np.isfinite(out_np))
    assert np.allclose(out_np, ref_np, atol=1e-3, rtol=1e-3), "mismatch vs reference"
    print("KERNEL_OK")
</pallas_src>

<mosaic_0001>
module attributes {stable_mosaic.version = 11 : i64} {
  func.func @_clinear_kernel(%arg0: memref<16x14xf32, #tpu.memory_space<vmem>>, %arg1: memref<2x14x32xf32, #tpu.memory_space<vmem>>, %arg2: memref<4x32xf32, #tpu.memory_space<vmem>>, %arg3: memref<16x32xf32, #tpu.memory_space<vmem>>) attributes {dimension_semantics = [], scalar_prefetch = 0 : i64, scratch_operands = 0 : i64, tpu.core_type = #tpu.core_type<tc>} {
    %c0 = arith.constant 0 : index
    %c0_0 = arith.constant 0 : index
    %0 = vector.load %arg0[%c0, %c0_0] : memref<16x14xf32, #tpu.memory_space<vmem>>, vector<16x14xf32>
    %c0_1 = arith.constant 0 : index
    %c0_2 = arith.constant 0 : index
    %c0_3 = arith.constant 0 : index
    %1 = vector.load %arg1[%c0_1, %c0_2, %c0_3] : memref<2x14x32xf32, #tpu.memory_space<vmem>>, vector<1x14x32xf32>
    %2 = vector.shape_cast %1 : vector<1x14x32xf32> to vector<14x32xf32>
    %cst = arith.constant dense<0.000000e+00> : vector<16x32xf32>
    %3 = tpu.matmul %0, %2, %cst {dimension_numbers = #tpu.dot_dimension_numbers<[1], [0], [0], [1], [0, 0, 1, 1], [], []>} : vector<16x14xf32>, vector<14x32xf32>, vector<16x32xf32> -> vector<16x32xf32>
    %c0_4 = arith.constant 0 : index
    %c0_5 = arith.constant 0 : index
    %4 = vector.load %arg2[%c0_4, %c0_5] : memref<4x32xf32, #tpu.memory_space<vmem>>, vector<1x32xf32>
    %5 = vector.broadcast %4 : vector<1x32xf32> to vector<16x32xf32>
    %6 = arith.addf %3, %5 : vector<16x32xf32>
    %c1 = arith.constant 1 : index
    %c0_6 = arith.constant 0 : index
    %c0_7 = arith.constant 0 : index
    %7 = vector.load %arg1[%c1, %c0_6, %c0_7] : memref<2x14x32xf32, #tpu.memory_space<vmem>>, vector<1x14x32xf32>
    %8 = vector.shape_cast %7 : vector<1x14x32xf32> to vector<14x32xf32>
    %cst_8 = arith.constant dense<0.000000e+00> : vector<16x32xf32>
    %9 = tpu.matmul %0, %8, %cst_8 {dimension_numbers = #tpu.dot_dimension_numbers<[1], [0], [0], [1], [0, 0, 1, 1], [], []>} : vector<16x14xf32>, vector<14x32xf32>, vector<16x32xf32> -> vector<16x32xf32>
    %c1_9 = arith.constant 1 : index
    %c0_10 = arith.constant 0 : index
    %10 = vector.load %arg2[%c1_9, %c0_10] : memref<4x32xf32, #tpu.memory_space<vmem>>, vector<1x32xf32>
    %11 = vector.broadcast %10 : vector<1x32xf32> to vector<16x32xf32>
    %12 = arith.addf %9, %11 : vector<16x32xf32>
    %13 = arith.negf %12 : vector<16x32xf32>
    %14 = math.exp %13 : vector<16x32xf32>
    %cst_11 = arith.constant 1.000000e+00 : f32
    %15 = vector.broadcast %cst_11 : f32 to vector<16x32xf32>
    %16 = arith.addf %15, %14 : vector<16x32xf32>
    %17 = arith.divf %15, %16 : vector<16x32xf32>
    %18 = arith.mulf %6, %17 : vector<16x32xf32>
    %19 = math.tanh %18 : vector<16x32xf32>
    %cst_12 = arith.constant dense<0.000000e+00> : vector<32xf32>
    %20 = vector.multi_reduction <add>, %19, %cst_12 [0] : vector<16x32xf32> to vector<32xf32>
    %21 = vector.shape_cast %20 : vector<32xf32> to vector<1x32xf32>
    %cst_13 = arith.constant 1.600000e+01 : f32
    %22 = vector.broadcast %cst_13 : f32 to vector<1x32xf32>
    %23 = arith.divf %21, %22 : vector<1x32xf32>
    %24 = arith.mulf %19, %19 : vector<16x32xf32>
    %cst_14 = arith.constant dense<0.000000e+00> : vector<32xf32>
    %25 = vector.multi_reduction <add>, %24, %cst_14 [0] : vector<16x32xf32> to vector<32xf32>
    %26 = vector.shape_cast %25 : vector<32xf32> to vector<1x32xf32>
    %cst_15 = arith.constant 1.600000e+01 : f32
    %27 = vector.broadcast %cst_15 : f32 to vector<1x32xf32>
    %28 = arith.divf %26, %27 : vector<1x32xf32>
    %29 = arith.mulf %23, %23 : vector<1x32xf32>
    %30 = arith.subf %28, %29 : vector<1x32xf32>
    %31 = vector.broadcast %23 : vector<1x32xf32> to vector<16x32xf32>
    %32 = arith.subf %19, %31 : vector<16x32xf32>
    %cst_16 = arith.constant 9.99999974E-6 : f32
    %33 = vector.broadcast %cst_16 : f32 to vector<1x32xf32>
    %34 = arith.addf %30, %33 : vector<1x32xf32>
    %35 = math.rsqrt %34 : vector<1x32xf32>
    %36 = vector.broadcast %35 : vector<1x32xf32> to vector<16x32xf32>
    %37 = arith.mulf %32, %36 : vector<16x32xf32>
    %c2 = arith.constant 2 : index
    %c0_17 = arith.constant 0 : index
    %38 = vector.load %arg2[%c2, %c0_17] : memref<4x32xf32, #tpu.memory_space<vmem>>, vector<1x32xf32>
    %39 = vector.broadcast %38 : vector<1x32xf32> to vector<16x32xf32>
    %40 = arith.mulf %37, %39 : vector<16x32xf32>
    %c3 = arith.constant 3 : index
    %c0_18 = arith.constant 0 : index
    %41 = vector.load %arg2[%c3, %c0_18] : memref<4x32xf32, #tpu.memory_space<vmem>>, vector<1x32xf32>
    %42 = vector.broadcast %41 : vector<1x32xf32> to vector<16x32xf32>
    %43 = arith.addf %40, %42 : vector<16x32xf32>
    %c0_19 = arith.constant 0 : index
    %c0_20 = arith.constant 0 : index
    %44 = vector.load %arg3[%c0_19, %c0_20] : memref<16x32xf32, #tpu.memory_space<vmem>>, vector<16x32xf32>
    tpu.vector_store %arg3[%c0_19, %c0_20], %43 {strides = array<i32>} : memref<16x32xf32, #tpu.memory_space<vmem>>, vector<16x32xf32>,
    return
  }
}

</mosaic_0001>

<bundles_post_ra>
// kernel: _clinear_forward_impl.1
= control target key start
LH: loop header
LB: loop body
LE: loop exit
PB: predicated region body
PF: predicated region fallthrough
CT: control target
= control target key end

     0   :  { %vm31_vm0 = vcmask 1045504   ;;  %vm366_vm1 = vmmov 1   ;;  %vm24_vm3 = vcmask 113664   ;;  %s438_s0 = inlined_call_operand.vmem [shape: f32[16,14], index: 0, kind: input, shape index: {}]   ;;  %s439_s1 = inlined_call_operand.vmem [shape: f32[2,14,32], index: 1, kind: input, shape index: {}]   ;;  %s440_s2 = inlined_call_operand.vmem [shape: f32[4,32], index: 2, kind: input, shape index: {}]   ;;  %s441_s3 = inlined_call_operand.hbm [shape: f32[16,32], index: 3, kind: output, shape index: {}]  }
   0x1   :  { %v280_v0 = vld [vmem:[%s439_s1 + $0x10] sm:$0xff]  ;;  %v281_v1 = vld [vmem:[%s439_s1 + $0x18] sm:$0x3f]  ;;  %v15_v2 = vld [vmem:[%s438_s0] sm:$0xff] }
   0x2   :  { %vm313_vm2 = vmpackc.low %vm31_vm0, %vm366_vm1  ;;  %v318_v3 = vpack.c.bf16 %v281_v1, %v280_v0  ;;  %v17_v4 = vld [vmem:[%s439_s1] sm:$0xff]  ;;  %309 = vmatprep.mubr.msk.f32.mxu1 %vm24_vm3, %v15_v2  ;;  %v18_v5 = vld [vmem:[%s439_s1 + $0x8] sm:$0x3f]  ;;  %302 = vmatprep.mubr.msk.f32.mxu0 %vm24_vm3, %v15_v2 }
   0x3   :  { %8 = vsyncpa [#allocation3], 0  ;;  %v312_v6 = vpack.c.bf16 %v18_v5, %v17_v4  ;;  %v16_v7 = vld [vmem:[%s438_s0 + $0x8] sm:$0xff]  ;;  %v282_v8 = vld [vmem:[%s440_s2 + $0x1] ss:$0 sm:$0xff]  ;;  %vm212_vm4 = vcmask 261120  }
   0x4   :  { %320 = vmatprep.subr.msk.bf16.mxu1 %vm313_vm2, %v318_v3  ;;  %v276_v21 = vld [vmem:[%s440_s2] ss:$0 sm:$0xff]  ;;  %v288_v58 = vld [vmem:[%s440_s2 + $0x2] ss:$0 sm:$0xff]  ;;  %s367_s28 = smov [#allocation2]  }
   0x5   :  { %323 = vmatpush3.bf16.msk.msra.mxu1 %vm313_vm2, %v318_v3  ;;  %314 = vmatprep.subr.msk.bf16.mxu0 %vm313_vm2, %v312_v6  ;;  %s265_s29 = sshll.u32 %s367_s28, 4  ;;  %v289_v61 = vld [vmem:[%s440_s2 + $0x3] ss:$0 sm:$0xff]  ;;  %s266_s29 = int_to_ptr.vmem [resolvable:$true] %s265_s29 }
   0x6   :  { %317 = vmatpush3.bf16.msk.msra.mxu0 %vm313_vm2, %v312_v6  ;;  %s342_s5 = scalar_lea.vmem %s266_s29, 256  ;;  %p347_p1 = scmp.lt.s32.totalorder %s266_s29, %s266_s29 }
   0x7   :  { %p343_p0 = scmp.ne.s32.totalorder %s266_s29, %s342_s5  ;;  %p348_p2 = scmp.lt.s32.totalorder %s342_s5, %s342_s5 }
   0x8   :  { %310 = vmatmul.mubr.msk.f32.vlgmr.msra.gmra.mrb[0].mxu1 %vm24_vm3, %v16_v7 }
   0x9   :  { %303 = vmatmul.mubr.msk.f32.vlgmr.msra.gmra.mrb[0].mxu0 %vm24_vm3, %v16_v7  ;;  %p349_p3 = por %p348_p2, %p347_p1 }
   0xb   :  { %p350_p4 = pnand %p349_p3, %p343_p0 }
  0xdb   :  { %v311_v9 = vpop.f32.mrb[0].mxu1 }
  0xdc   :  { %v193_v10 = vadd.f32 %v311_v9, %v282_v8  ;;  %v187_v11 = vpop.f32.mrb[1].mxu1  ;;  %v304_v13 = vpop.f32.mrb[0].mxu0 }
  0xdd   :  { %v188_v12 = vadd.f32 %v282_v8, %v187_v11  ;;  %v101_v15 = vpop.f32.mrb[1].mxu0  ;;  %v107_v22 = vadd.f32 %v304_v13, %v276_v21 }
  0xde   :  { %v287_v14 = vmul.f32 -1.442695, %v193_v10  ;;  %v102_v23 = vadd.f32 %v276_v21, %v101_v15 }
  0xdf   :  { %v286_v16 = vmul.f32 -1.442695, %v188_v12 }
  0xe0   :  { %328 = vpow2.f32 %v287_v14 }
  0xe1   :  { %330 = vpow2.f32 %v286_v16 }
  0xea   :  { %v329_v17 = vpop.eup %328 }
  0xeb   :  { %v331_v18 = vpop.eup %330  ;;  %v203_v19 = vadd.f32 1.0, %v329_v17 }
  0xec   :  { %v202_v20 = vadd.f32 1.0, %v331_v18 }
  0xed   :  { %332 = vrcp.f32 %v203_v19 }
  0xee   :  { %334 = vrcp.f32 %v202_v20 }
  0xf7   :  { %v333_v24 = vpop.eup %332 }
  0xf8   :  { %v335_v25 = vpop.eup %334  ;;  %v209_v26 = vmul.f32 %v333_v24, %v107_v22 }
  0xf9   :  { %v208_v27 = vmul.f32 %v335_v25, %v102_v23 }
  0xfa   :  { %336 = vtanh.f32 %v209_v26 }
  0xfb   :  { %338 = vtanh.f32 %v208_v27 }
 0x104   :  { %v337_v28 = vpop.eup %336 }
 0x105   :  { %v339_v29 = vpop.eup %338  ;;  %v225_v30 = vmul.f32 %v337_v28, %v337_v28  ;;  %v214_v31 = vsel %vm212_vm4, %v337_v28, 0.0 }
 0x106   :  { %v224_v32 = vmul.f32 %v339_v29, %v339_v29  ;;  %v213_v33 = vsel %vm212_vm4, %v339_v29, 0.0 }
 0x107   :  { %v215_v34 = vadd.f32 %v214_v31, %v213_v33  ;;  %v227_v35 = vsel %vm212_vm4, %v225_v30, 0.0 }
 0x108   :  { %v226_v36 = vsel %vm212_vm4, %v224_v32, 0.0 }
 0x109   :  { %v216_v37 = vrot.slane %v215_v34, 4  ;;  %v228_v38 = vadd.f32 %v227_v35, %v226_v36 }
 0x10b   :  { %v217_v39 = vadd.f32 %v216_v37, %v215_v34  ;;  %v229_v40 = vrot.slane %v228_v38, 4 }
 0x10d   :  { %v218_v41 = vrot.slane %v217_v39, 2  ;;  %v230_v42 = vadd.f32 %v229_v40, %v228_v38 }
 0x10f   :  { %v219_v43 = vadd.f32 %v218_v41, %v217_v39  ;;  %v231_v44 = vrot.slane %v230_v42, 2 }
 0x111   :  { %v220_v45 = vrot.slane %v219_v43, 1  ;;  %v232_v46 = vadd.f32 %v231_v44, %v230_v42 }
 0x113   :  { %v221_v47 = vadd.f32 %v220_v45, %v219_v43  ;;  %v233_v48 = vrot.slane %v232_v46, 1 }
 0x115   :  { %v223_v49 = vmul.f32 0.0625, %v221_v47  ;;  %v234_v50 = vadd.f32 %v233_v48, %v232_v46 }
 0x117   :  { %v235_v51 = vmul.f32 0.0625, %v234_v50  ;;  %v236_v52 = vmul.f32 %v223_v49, %v223_v49  ;;  %v238_v53 = vsub.f32 %v339_v29, %v223_v49  ;;  %v239_v54 = vsub.f32 %v337_v28, %v223_v49 }
 0x119   :  { %v237_v55 = vsub.f32 %v235_v51, %v236_v52 }
 0x11b   :  { %v240_v56 = vadd.f32 1e-05, %v237_v55 }
 0x11d   :  { %340 = vrsqrt.f32 %v240_v56 }
 0x127   :  { %v341_v57 = vpop.eup %340 }
 0x128   :  { %v242_v59 = vmul.f32 %v341_v57, %v238_v53  ;;  %v243_v60 = vmul.f32 %v341_v57, %v239_v54 }
 0x12a   :  { %v249_v62 = vmul.f32 %v288_v58, %v242_v59  ;;  %v250_v63 = vmul.f32 %v288_v58, %v243_v60 }
 0x12c   :  { %v256_v0 = vadd.f32 %v289_v61, %v249_v62  ;;  %v257_v1 = vadd.f32 %v289_v61, %v250_v63 }
 0x12e   :  { %258 = vst.msk [vmem:[#allocation2] sm:$0xff] %vm212_vm4, %v256_v0  ;;  %259 = vst.msk [vmem:[#allocation2 + $0x8] sm:$0xff] %vm212_vm4, %v257_v1 }
 0x12f   :  { %353 = shalt.err (!%p350_p4)
}
 0x130   :  { %s354_s2 = scalar_lea.hbm %s441_s3, 256 }
 0x131   :  { %p355_p5 = scmp.ne.s32.totalorder %s441_s3, %s354_s2  ;;  %p358_p6 = scmp.lt.u32.totalorder %s354_s2, %s441_s3 }
 0x133   :  { %p360_p7 = pnand %p358_p6, %p355_p5 }
 0x135   :  { %363 = shalt.err (!%p360_p7)
}
 0x136   :  { %s368_s12 = smov 128   ;;  %s369_s13 = smov 8  }
 0x137   :  { %271 = dma.vmem_to_hbm [thread:$0]  %s266_s29, 256, %s441_s3, [#allocation3], %s368_s12, %s368_s12, %s369_s13  }
 0x138   :  { %364 = dma.done.wait [#allocation3], 256  }
 0x139   :  { %365 = vsyncadd [#allocation3], 4294967040 }
 0x13a   :  { %275 = vsyncpa [#allocation3], 1 }

</bundles_post_ra>
